<compile_context>
chip_gen: v7x
topology: tpu7x:2x2x1
jax: 0.10.0
libtpu: 0.0.40
codegen_flags: <defaults>
</compile_context>

<pallas_src>
import math
import functools

import jax
import jax.numpy as jnp
from jax import lax
from jax.experimental import pallas as pl
from jax.experimental.pallas import tpu as pltpu


# --------------------------------------------------------------------------
# in-kernel helpers
# --------------------------------------------------------------------------
def _layernorm(x, gamma, beta, eps=1e-6):
    # BERT4Rec custom LayerNorm: unbiased std (Bessel), eps added to std.
    mean = jnp.mean(x, axis=-1, keepdims=True)
    diff = x - mean
    var = jnp.sum(diff * diff, axis=-1, keepdims=True) * (1.0 / (x.shape[-1] - 1))
    std = jnp.sqrt(var)
    # reciprocal goes to the (otherwise idle) EUP slot instead of a VPU divide.
    return gamma * diff * pl.reciprocal(std + eps, approx=True) + beta


def _gelu(x):
    # tanh-approximation GELU (the custom GELU class in the PyTorch module)
    return 0.5 * x * (1.0 + jnp.tanh(
        math.sqrt(2.0 / math.pi) * (x + 0.044715 * x * x * x)))


def _split_heads(x, num_heads, head_size):
    # (S, nh*d) -> (nh, S, d) via 2-D transpose + major-dim split + batched
    # last-two-dims transpose.  Avoids per-head 16-wide lane slices and
    # minor-dim-splitting reshapes.
    s = x.shape[0]
    xt = x.T.reshape(num_heads, head_size, s)       # (nh, d, S)
    return jnp.transpose(xt, (0, 2, 1))             # (nh, S, d)


def _merge_heads(x):
    # (nh, S, d) -> (S, nh*d)  (inverse of _split_heads / torch concat order)
    nh, s, d = x.shape
    return jnp.transpose(x, (0, 2, 1)).reshape(nh * d, s).T


# --------------------------------------------------------------------------
# Pallas kernels
# --------------------------------------------------------------------------
def transformer_block_kernel(x_ref, mask_ref,
                             wq_ref, bq_ref, wk_ref, bk_ref, wv_ref, bv_ref,
                             wo_ref, bo_ref,
                             ln1_g_ref, ln1_b_ref,
                             w1_ref, b1_ref, w2_ref, b2_ref,
                             ln2_g_ref, ln2_b_ref,
                             o_ref, *, num_heads, head_size):
    x = x_ref[0]                        # (S, H)
    key_invalid = mask_ref[0] == 0      # (1, S) hoisted key-padding compare

    # ---- attention sub-layer (pre-LN + residual) ----
    h = _layernorm(x, ln1_g_ref[...], ln1_b_ref[...])
    scale = 1.0 / math.sqrt(head_size)
    # apply 1/sqrt(d) once to q instead of to every (S,S) score matrix
    q = (jnp.dot(h, wq_ref[...], preferred_element_type=jnp.float32)
         + bq_ref[...]) * scale
    k = jnp.dot(h, wk_ref[...], preferred_element_type=jnp.float32) + bk_ref[...]
    v = jnp.dot(h, wv_ref[...], preferred_element_type=jnp.float32) + bv_ref[...]

    qh = _split_heads(q, num_heads, head_size)          # (nh, S, d)
    kt = k.T.reshape(num_heads, head_size, -1)          # (nh, d, S) (k needed transposed)
    vh = _split_heads(v, num_heads, head_size)          # (nh, S, d)

    # all heads at once: batched matmuls on the MXU
    scores = jnp.einsum('hqd,hdk->hqk', qh, kt,
                        preferred_element_type=jnp.float32)      # (nh, S, S)
    scores = jnp.where(key_invalid[None], -1e9, scores)          # masked_fill(mask==0,-1e9)
    scores = scores - jnp.max(scores, axis=-1, keepdims=True)
    p = jnp.exp(scores)
    p = p * pl.reciprocal(jnp.sum(p, axis=-1, keepdims=True), approx=True)
    ctx = jnp.einsum('hqk,hkd->hqd', p, vh,
                     preferred_element_type=jnp.float32)         # (nh, S, d)

    attn = _merge_heads(ctx)                                      # (S, nh*d)
    attn = jnp.dot(attn, wo_ref[...],
                   preferred_element_type=jnp.float32) + bo_ref[...]
    x = x + attn

    # ---- feed-forward sub-layer (pre-LN + residual) ----
    h2 = _layernorm(x, ln2_g_ref[...], ln2_b_ref[...])
    f = jnp.dot(h2, w1_ref[...], preferred_element_type=jnp.float32) + b1_ref[...]
    f = _gelu(f)
    f = jnp.dot(f, w2_ref[...], preferred_element_type=jnp.float32) + b2_ref[...]
    o_ref[0] = x + f


def head_kernel(x_ref, wl_ref, bl_ref, emb_ref, bias_ref, o_ref, h_scratch):
    # GELU(x @ W_lin + b_lin) does not depend on the vocab tile: compute it
    # once per batch element (vocab tile 0) and keep it in VMEM scratch.
    @pl.when(pl.program_id(1) == 0)
    def _():
        h = jnp.dot(x_ref[0], wl_ref[...],
                    preferred_element_type=jnp.float32) + bl_ref[...]
        h_scratch[...] = _gelu(h)

    # scores = h @ embedding^T as a trans_b matmul: contract last dims
    # directly on the MXU -- no in-kernel transpose of the (V_tile, H) block.
    scores = lax.dot_general(
        h_scratch[...], emb_ref[...],
        dimension_numbers=(((1,), (1,)), ((), ())),
        preferred_element_type=jnp.float32)
    o_ref[0] = scores + bias_ref[...]


# --------------------------------------------------------------------------
# wrappers (pallas_call plumbing)
# --------------------------------------------------------------------------
def transformer_block(x, mask, p, num_heads, head_size):
    B, S, H = x.shape
    dh = num_heads * head_size
    ff = 4 * H
    kernel = functools.partial(transformer_block_kernel,
                               num_heads=num_heads, head_size=head_size)

    def rep(shape):
        # whole-array block, replicated across the batch grid axis
        return pl.BlockSpec(shape, lambda b: (0,) * len(shape))

    in_specs = [
        pl.BlockSpec((1, S, H), lambda b: (b, 0, 0)),   # x
        pl.BlockSpec((1, 1, S), lambda b: (b, 0, 0)),   # key-validity mask (B,1,S)
        rep((H, dh)), rep((1, dh)),                     # wq, bq
        rep((H, dh)), rep((1, dh)),                     # wk, bk
        rep((H, dh)), rep((1, dh)),                     # wv, bv
        rep((dh, H)), rep((1, H)),                      # wo, bo
        rep((1, H)), rep((1, H)),                       # ln1 gamma/beta
        rep((H, ff)), rep((1, ff)),                     # ffn w1, b1
        rep((ff, H)), rep((1, H)),                      # ffn w2, b2
        rep((1, H)), rep((1, H)),                       # ln2 gamma/beta
    ]
    cost = pl.CostEstimate(
        flops=2 * B * S * (3 * H * dh + 2 * S * dh + dh * H + 2 * H * ff),
        transcendentals=B * (num_heads * S * S + S * ff),
        bytes_accessed=4 * (2 * B * S * H + B * S + 3 * H * dh + dh * H
                            + 2 * H * ff + 4 * dh + 6 * H + ff))
    return pl.pallas_call(
        kernel,
        out_shape=jax.ShapeDtypeStruct((B, S, H), x.dtype),
        grid=(B,),
        in_specs=in_specs,
        out_specs=pl.BlockSpec((1, S, H), lambda b: (b, 0, 0)),
        compiler_params=pltpu.CompilerParams(
            dimension_semantics=("parallel",)),         # batch steps independent
        cost_estimate=cost,
    )(x, mask,
      p["wq"], p["bq"], p["wk"], p["bk"], p["wv"], p["bv"],
      p["wo"], p["bo"], p["ln1_g"], p["ln1_b"],
      p["w1"], p["b1"], p["w2"], p["b2"], p["ln2_g"], p["ln2_b"])


def bert_head(x, w_lin, b_lin, embedding_weight, out_bias, *, tile_v=128):
    B, S, H = x.shape
    V = embedding_weight.shape[0]
    # pad vocab to a lane-dense multiple of 128 so the output block avoids
    # masked partial stores; padded rows are dropped after the call.
    v_pad = ((V + tile_v - 1) // tile_v) * tile_v
    if v_pad != V:
        embedding_weight = jnp.pad(embedding_weight, ((0, v_pad - V), (0, 0)))
        out_bias = jnp.pad(out_bias, ((0, 0), (0, v_pad - V)))
    nvt = v_pad // tile_v

    in_specs = [
        pl.BlockSpec((1, S, H), lambda b, v: (b, 0, 0)),    # x
        pl.BlockSpec((H, H), lambda b, v: (0, 0)),          # linear W
        pl.BlockSpec((1, H), lambda b, v: (0, 0)),          # linear b
        pl.BlockSpec((tile_v, H), lambda b, v: (v, 0)),     # embedding tile
        pl.BlockSpec((1, tile_v), lambda b, v: (0, v)),     # output bias tile
    ]
    cost = pl.CostEstimate(
        flops=2 * B * S * (H * H + H * v_pad),
        transcendentals=B * S * H,
        bytes_accessed=4 * (B * S * H + H * H + H + v_pad * H + v_pad
                            + B * S * v_pad))
    scores = pl.pallas_call(
        head_kernel,
        out_shape=jax.ShapeDtypeStruct((B, S, v_pad), x.dtype),
        grid=(B, nvt),                                      # vocab-tiled head
        in_specs=in_specs,
        out_specs=pl.BlockSpec((1, S, tile_v), lambda b, v: (b, 0, v)),
        scratch_shapes=[pltpu.VMEM((S, H), jnp.float32)],   # cached GELU(linear(x))
        compiler_params=pltpu.CompilerParams(
            dimension_semantics=("parallel", "arbitrary")),
        cost_estimate=cost,
    )(x, w_lin, b_lin, embedding_weight, out_bias)
    return scores[:, :, :V]


def bert_forward(x, embedding_weight, mask, params, num_heads, head_size):
    for blk in params["blocks"]:
        x = transformer_block(x, mask, blk, num_heads, head_size)
    return bert_head(x, params["w_lin"], params["b_lin"],
                     embedding_weight, params["out_bias"])


# --------------------------------------------------------------------------
# deterministic parameter init (matches module __init__ shapes)
# --------------------------------------------------------------------------
def init_params(key, hidden, heads, head_size, layers, vocab):
    dh = heads * head_size
    ff = 4 * hidden
    f32 = jnp.float32

    def dense(k, fan_in, fan_out):
        return jax.random.normal(k, (fan_in, fan_out), f32) * 0.02

    keys = jax.random.split(key, layers + 1)
    blocks = []
    for l in range(layers):
        ks = jax.random.split(keys[l], 6)
        blocks.append(dict(
            wq=dense(ks[0], hidden, dh), bq=jnp.zeros((1, dh), f32),
            wk=dense(ks[1], hidden, dh), bk=jnp.zeros((1, dh), f32),
            wv=dense(ks[2], hidden, dh), bv=jnp.zeros((1, dh), f32),
            wo=dense(ks[3], dh, hidden), bo=jnp.zeros((1, hidden), f32),
            ln1_g=jnp.ones((1, hidden), f32), ln1_b=jnp.zeros((1, hidden), f32),
            w1=dense(ks[4], hidden, ff), b1=jnp.zeros((1, ff), f32),
            w2=dense(ks[5], ff, hidden), b2=jnp.zeros((1, hidden), f32),
            ln2_g=jnp.ones((1, hidden), f32), ln2_b=jnp.zeros((1, hidden), f32),
        ))
    w_lin = dense(keys[layers], hidden, hidden)
    return dict(
        blocks=blocks,
        w_lin=w_lin,
        b_lin=jnp.zeros((1, hidden), f32),
        out_bias=jnp.zeros((1, vocab), f32),   # torch.zeros(num_items + 2)
    )


# --------------------------------------------------------------------------
if __name__ == "__main__":
    # small, forward-consistent shapes
    B, S = 2, 8
    HIDDEN, HEADS, HEAD_SIZE, LAYERS = 32, 2, 16, 2
    NUM_ITEMS = 50
    VOCAB = NUM_ITEMS + 2

    key = jax.random.PRNGKey(0)
    k_x, k_emb, k_ids, k_params = jax.random.split(key, 4)

    x = jax.random.normal(k_x, (B, S, HIDDEN), jnp.float32)
    embedding_weight = jax.random.normal(k_emb, (VOCAB, HIDDEN), jnp.float32) * 0.02

    # key-validity mask (B, 1, S): 1 = attend, 0 = padding token
    ids = jax.random.randint(k_ids, (B, S), 1, VOCAB)
    ids = ids.at[0, -2:].set(0)                       # some padding for batch 0
    valid = (ids > 0).astype(jnp.float32)             # (B, S)
    mask = valid[:, None, :]                          # (B, 1, S)

    params = init_params(k_params, HIDDEN, HEADS, HEAD_SIZE, LAYERS, VOCAB)

    scores = bert_forward(x, embedding_weight, mask, params, HEADS, HEAD_SIZE)
    scores = jax.block_until_ready(scores)

    assert scores.shape == (B, S, VOCAB) and scores.dtype == jnp.float32
    print("KERNEL_OK")
</pallas_src>

<mosaic_0001>
module attributes {stable_mosaic.version = 11 : i64} {
  func.func @transformer_block_kernel(%arg0: i32, %arg1: memref<1x8x32xf32, #tpu.memory_space<vmem>>, %arg2: memref<1x1x8xf32, #tpu.memory_space<vmem>>, %arg3: memref<32x32xf32, #tpu.memory_space<vmem>>, %arg4: memref<1x32xf32, #tpu.memory_space<vmem>>, %arg5: memref<32x32xf32, #tpu.memory_space<vmem>>, %arg6: memref<1x32xf32, #tpu.memory_space<vmem>>, %arg7: memref<32x32xf32, #tpu.memory_space<vmem>>, %arg8: memref<1x32xf32, #tpu.memory_space<vmem>>, %arg9: memref<32x32xf32, #tpu.memory_space<vmem>>, %arg10: memref<1x32xf32, #tpu.memory_space<vmem>>, %arg11: memref<1x32xf32, #tpu.memory_space<vmem>>, %arg12: memref<1x32xf32, #tpu.memory_space<vmem>>, %arg13: memref<32x128xf32, #tpu.memory_space<vmem>>, %arg14: memref<1x128xf32, #tpu.memory_space<vmem>>, %arg15: memref<128x32xf32, #tpu.memory_space<vmem>>, %arg16: memref<1x32xf32, #tpu.memory_space<vmem>>, %arg17: memref<1x32xf32, #tpu.memory_space<vmem>>, %arg18: memref<1x32xf32, #tpu.memory_space<vmem>>, %arg19: memref<1x8x32xf32, #tpu.memory_space<vmem>>) attributes {dimension_semantics = [#tpu.dimension_semantics<parallel>], iteration_bounds = array<i64: 2>, scalar_prefetch = 0 : i64, scratch_operands = 0 : i64, tpu.core_type = #tpu.core_type<tc>, window_params = [{transform_indices = @transform_0, window_bounds = array<i64: 1, 8, 32>}, {transform_indices = @transform_1, window_bounds = array<i64: 1, 1, 8>}, {pipeline_mode = #tpu.pipeline_mode<synchronous>, transform_indices = @transform_2, window_bounds = array<i64: 32, 32>}, {pipeline_mode = #tpu.pipeline_mode<synchronous>, transform_indices = @transform_3, window_bounds = array<i64: 1, 32>}, {pipeline_mode = #tpu.pipeline_mode<synchronous>, transform_indices = @transform_4, window_bounds = array<i64: 32, 32>}, {pipeline_mode = #tpu.pipeline_mode<synchronous>, transform_indices = @transform_5, window_bounds = array<i64: 1, 32>}, {pipeline_mode = #tpu.pipeline_mode<synchronous>, transform_indices = @transform_6, window_bounds = array<i64: 32, 32>}, {pipeline_mode = #tpu.pipeline_mode<synchronous>, transform_indices = @transform_7, window_bounds = array<i64: 1, 32>}, {pipeline_mode = #tpu.pipeline_mode<synchronous>, transform_indices = @transform_8, window_bounds = array<i64: 32, 32>}, {pipeline_mode = #tpu.pipeline_mode<synchronous>, transform_indices = @transform_9, window_bounds = array<i64: 1, 32>}, {pipeline_mode = #tpu.pipeline_mode<synchronous>, transform_indices = @transform_10, window_bounds = array<i64: 1, 32>}, {pipeline_mode = #tpu.pipeline_mode<synchronous>, transform_indices = @transform_11, window_bounds = array<i64: 1, 32>}, {pipeline_mode = #tpu.pipeline_mode<synchronous>, transform_indices = @transform_12, window_bounds = array<i64: 32, 128>}, {pipeline_mode = #tpu.pipeline_mode<synchronous>, transform_indices = @transform_13, window_bounds = array<i64: 1, 128>}, {pipeline_mode = #tpu.pipeline_mode<synchronous>, transform_indices = @transform_14, window_bounds = array<i64: 128, 32>}, {pipeline_mode = #tpu.pipeline_mode<synchronous>, transform_indices = @transform_15, window_bounds = array<i64: 1, 32>}, {pipeline_mode = #tpu.pipeline_mode<synchronous>, transform_indices = @transform_16, window_bounds = array<i64: 1, 32>}, {pipeline_mode = #tpu.pipeline_mode<synchronous>, transform_indices = @transform_17, window_bounds = array<i64: 1, 32>}, {transform_indices = @transform_18, window_bounds = array<i64: 1, 8, 32>}]} {
    %c0 = arith.constant 0 : index
    %c0_0 = arith.constant 0 : index
    %c0_1 = arith.constant 0 : index
    %0 = vector.load %arg1[%c0, %c0_0, %c0_1] : memref<1x8x32xf32, #tpu.memory_space<vmem>>, vector<1x8x32xf32>
    %1 = vector.shape_cast %0 : vector<1x8x32xf32> to vector<8x32xf32>
    %c0_2 = arith.constant 0 : index
    %c0_3 = arith.constant 0 : index
    %c0_4 = arith.constant 0 : index
    %2 = vector.load %arg2[%c0_2, %c0_3, %c0_4] : memref<1x1x8xf32, #tpu.memory_space<vmem>>, vector<1x1x8xf32>
    %3 = vector.shape_cast %2 : vector<1x1x8xf32> to vector<1x8xf32>
    %cst = arith.constant 0.000000e+00 : f32
    %4 = vector.broadcast %cst : f32 to vector<1x8xf32>
    %5 = arith.cmpf oeq, %3, %4 : vector<1x8xf32>
    %c0_5 = arith.constant 0 : index
    %c0_6 = arith.constant 0 : index
    %6 = vector.load %arg11[%c0_5, %c0_6] : memref<1x32xf32, #tpu.memory_space<vmem>>, vector<1x32xf32>
    %c0_7 = arith.constant 0 : index
    %c0_8 = arith.constant 0 : index
    %7 = vector.load %arg12[%c0_7, %c0_8] : memref<1x32xf32, #tpu.memory_space<vmem>>, vector<1x32xf32>
    %cst_9 = arith.constant dense<0.000000e+00> : vector<8xf32>
    %8 = vector.multi_reduction <add>, %1, %cst_9 [1] : vector<8x32xf32> to vector<8xf32>
    %9 = vector.shape_cast %8 : vector<8xf32> to vector<8x1xf32>
    %cst_10 = arith.constant 3.200000e+01 : f32
    %10 = vector.broadcast %cst_10 : f32 to vector<8x1xf32>
    %11 = arith.divf %9, %10 : vector<8x1xf32>
    %12 = vector.broadcast %11 : vector<8x1xf32> to vector<8x32xf32>
    %13 = arith.subf %1, %12 : vector<8x32xf32>
    %14 = arith.mulf %13, %13 : vector<8x32xf32>
    %cst_11 = arith.constant dense<0.000000e+00> : vector<8xf32>
    %15 = vector.multi_reduction <add>, %14, %cst_11 [1] : vector<8x32xf32> to vector<8xf32>
    %16 = vector.shape_cast %15 : vector<8xf32> to vector<8x1xf32>
    %cst_12 = arith.constant 0.0322580636 : f32
    %17 = vector.broadcast %cst_12 : f32 to vector<8x1xf32>
    %18 = arith.mulf %16, %17 : vector<8x1xf32>
    %19 = math.sqrt %18 : vector<8x1xf32>
    %20 = vector.broadcast %6 : vector<1x32xf32> to vector<8x32xf32>
    %21 = arith.mulf %20, %13 : vector<8x32xf32>
    %cst_13 = arith.constant 9.99999997E-7 : f32
    %22 = vector.broadcast %cst_13 : f32 to vector<8x1xf32>
    %23 = arith.addf %19, %22 : vector<8x1xf32>
    %24 = tpu.reciprocal %23 {approx = true} : vector<8x1xf32> -> vector<8x1xf32>
    %25 = vector.broadcast %24 : vector<8x1xf32> to vector<8x32xf32>
    %26 = arith.mulf %21, %25 : vector<8x32xf32>
    %27 = vector.broadcast %7 : vector<1x32xf32> to vector<8x32xf32>
    %28 = arith.addf %26, %27 : vector<8x32xf32>
    %c0_14 = arith.constant 0 : index
    %c0_15 = arith.constant 0 : index
    %29 = vector.load %arg3[%c0_14, %c0_15] : memref<32x32xf32, #tpu.memory_space<vmem>>, vector<32x32xf32>
    %cst_16 = arith.constant dense<0.000000e+00> : vector<8x32xf32>
    %30 = tpu.matmul %28, %29, %cst_16 {dimension_numbers = #tpu.dot_dimension_numbers<[1], [0], [0], [1], [0, 0, 1, 1], [], []>} : vector<8x32xf32>, vector<32x32xf32>, vector<8x32xf32> -> vector<8x32xf32>
    %c0_17 = arith.constant 0 : index
    %c0_18 = arith.constant 0 : index
    %31 = vector.load %arg4[%c0_17, %c0_18] : memref<1x32xf32, #tpu.memory_space<vmem>>, vector<1x32xf32>
    %32 = vector.broadcast %31 : vector<1x32xf32> to vector<8x32xf32>
    %33 = arith.addf %30, %32 : vector<8x32xf32>
    %cst_19 = arith.constant 2.500000e-01 : f32
    %34 = vector.broadcast %cst_19 : f32 to vector<8x32xf32>
    %35 = arith.mulf %33, %34 : vector<8x32xf32>
    %c0_20 = arith.constant 0 : index
    %c0_21 = arith.constant 0 : index
    %36 = vector.load %arg5[%c0_20, %c0_21] : memref<32x32xf32, #tpu.memory_space<vmem>>, vector<32x32xf32>
    %cst_22 = arith.constant dense<0.000000e+00> : vector<8x32xf32>
    %37 = tpu.matmul %28, %36, %cst_22 {dimension_numbers = #tpu.dot_dimension_numbers<[1], [0], [0], [1], [0, 0, 1, 1], [], []>} : vector<8x32xf32>, vector<32x32xf32>, vector<8x32xf32> -> vector<8x32xf32>
    %c0_23 = arith.constant 0 : index
    %c0_24 = arith.constant 0 : index
    %38 = vector.load %arg6[%c0_23, %c0_24] : memref<1x32xf32, #tpu.memory_space<vmem>>, vector<1x32xf32>
    %39 = vector.broadcast %38 : vector<1x32xf32> to vector<8x32xf32>
    %40 = arith.addf %37, %39 : vector<8x32xf32>
    %c0_25 = arith.constant 0 : index
    %c0_26 = arith.constant 0 : index
    %41 = vector.load %arg7[%c0_25, %c0_26] : memref<32x32xf32, #tpu.memory_space<vmem>>, vector<32x32xf32>
    %cst_27 = arith.constant dense<0.000000e+00> : vector<8x32xf32>
    %42 = tpu.matmul %28, %41, %cst_27 {dimension_numbers = #tpu.dot_dimension_numbers<[1], [0], [0], [1], [0, 0, 1, 1], [], []>} : vector<8x32xf32>, vector<32x32xf32>, vector<8x32xf32> -> vector<8x32xf32>
    %c0_28 = arith.constant 0 : index
    %c0_29 = arith.constant 0 : index
    %43 = vector.load %arg8[%c0_28, %c0_29] : memref<1x32xf32, #tpu.memory_space<vmem>>, vector<1x32xf32>
    %44 = vector.broadcast %43 : vector<1x32xf32> to vector<8x32xf32>
    %45 = arith.addf %42, %44 : vector<8x32xf32>
    %46 = tpu.transpose %35, [1, 0] : vector<8x32xf32> -> vector<32x8xf32>
    %47 = vector.shape_cast %46 : vector<32x8xf32> to vector<2x16x8xf32>
    %48 = tpu.transpose %47, [0, 2, 1] : vector<2x16x8xf32> -> vector<2x8x16xf32>
    %49 = tpu.transpose %40, [1, 0] : vector<8x32xf32> -> vector<32x8xf32>
    %50 = vector.shape_cast %49 : vector<32x8xf32> to vector<2x16x8xf32>
    %51 = tpu.transpose %45, [1, 0] : vector<8x32xf32> -> vector<32x8xf32>
    %52 = vector.shape_cast %51 : vector<32x8xf32> to vector<2x16x8xf32>
    %53 = tpu.transpose %52, [0, 2, 1] : vector<2x16x8xf32> -> vector<2x8x16xf32>
    "tpu.trace_start"() <{level = 10 : i32, message = "hqd,hdk->hqk"}> : () -> ()
    %cst_30 = arith.constant dense<0.000000e+00> : vector<2x8x8xf32>
    %54 = tpu.matmul %48, %50, %cst_30 {dimension_numbers = #tpu.dot_dimension_numbers<[2], [1], [1], [2], [0, 0, 0, 1, 1, 2], [0], [0]>} : vector<2x8x16xf32>, vector<2x16x8xf32>, vector<2x8x8xf32> -> vector<2x8x8xf32>
    "tpu.trace_stop"() : () -> ()
    %55 = vector.shape_cast %5 : vector<1x8xi1> to vector<1x1x8xi1>
    %cst_31 = arith.constant -1.000000e+09 : f32
    %56 = vector.shape_cast %55 : vector<1x1x8xi1> to vector<1x1x8xi1>
    %57 = vector.broadcast %56 : vector<1x1x8xi1> to vector<2x8x8xi1>
    %58 = vector.broadcast %cst_31 : f32 to vector<2x8x8xf32>
    %59 = arith.select %57, %58, %54 : vector<2x8x8xi1>, vector<2x8x8xf32>
    %cst_32 = arith.constant dense<0xFF800000> : vector<2x8xf32>
    %60 = vector.multi_reduction <maximumf>, %59, %cst_32 [2] : vector<2x8x8xf32> to vector<2x8xf32>
    %61 = vector.shape_cast %60 : vector<2x8xf32> to vector<2x8x1xf32>
    %62 = vector.broadcast %61 : vector<2x8x1xf32> to vector<2x8x8xf32>
    %63 = arith.subf %59, %62 : vector<2x8x8xf32>
    %64 = math.exp %63 : vector<2x8x8xf32>
    %cst_33 = arith.constant dense<0.000000e+00> : vector<2x8xf32>
    %65 = vector.multi_reduction <add>, %64, %cst_33 [2] : vector<2x8x8xf32> to vector<2x8xf32>
    %66 = vector.shape_cast %65 : vector<2x8xf32> to vector<2x8x1xf32>
    %67 = tpu.reciprocal %66 {approx = true} : vector<2x8x1xf32> -> vector<2x8x1xf32>
    %68 = vector.broadcast %67 : vector<2x8x1xf32> to vector<2x8x8xf32>
    %69 = arith.mulf %64, %68 : vector<2x8x8xf32>
    "tpu.trace_start"() <{level = 10 : i32, message = "hqk,hkd->hqd"}> : () -> ()
    %cst_34 = arith.constant dense<0.000000e+00> : vector<2x8x16xf32>
    %70 = tpu.matmul %69, %53, %cst_34 {dimension_numbers = #tpu.dot_dimension_numbers<[2], [1], [1], [2], [0, 0, 0, 1, 1, 2], [0], [0]>} : vector<2x8x8xf32>, vector<2x8x16xf32>, vector<2x8x16xf32> -> vector<2x8x16xf32>
    "tpu.trace_stop"() : () -> ()
    %71 = tpu.transpose %70, [0, 2, 1] : vector<2x8x16xf32> -> vector<2x16x8xf32>
    %72 = vector.shape_cast %71 : vector<2x16x8xf32> to vector<32x8xf32>
    %73 = tpu.transpose %72, [1, 0] : vector<32x8xf32> -> vector<8x32xf32>
    %c0_35 = arith.constant 0 : index
    %c0_36 = arith.constant 0 : index
    %74 = vector.load %arg9[%c0_35, %c0_36] : memref<32x32xf32, #tpu.memory_space<vmem>>, vector<32x32xf32>
    %cst_37 = arith.constant dense<0.000000e+00> : vector<8x32xf32>
    %75 = tpu.matmul %73, %74, %cst_37 {dimension_numbers = #tpu.dot_dimension_numbers<[1], [0], [0], [1], [0, 0, 1, 1], [], []>} : vector<8x32xf32>, vector<32x32xf32>, vector<8x32xf32> -> vector<8x32xf32>
    %c0_38 = arith.constant 0 : index
    %c0_39 = arith.constant 0 : index
    %76 = vector.load %arg10[%c0_38, %c0_39] : memref<1x32xf32, #tpu.memory_space<vmem>>, vector<1x32xf32>
    %77 = vector.broadcast %76 : vector<1x32xf32> to vector<8x32xf32>
    %78 = arith.addf %75, %77 : vector<8x32xf32>
    %79 = arith.addf %1, %78 : vector<8x32xf32>
    %c0_40 = arith.constant 0 : index
    %c0_41 = arith.constant 0 : index
    %80 = vector.load %arg17[%c0_40, %c0_41] : memref<1x32xf32, #tpu.memory_space<vmem>>, vector<1x32xf32>
    %c0_42 = arith.constant 0 : index
    %c0_43 = arith.constant 0 : index
    %81 = vector.load %arg18[%c0_42, %c0_43] : memref<1x32xf32, #tpu.memory_space<vmem>>, vector<1x32xf32>
    %cst_44 = arith.constant dense<0.000000e+00> : vector<8xf32>
    %82 = vector.multi_reduction <add>, %79, %cst_44 [1] : vector<8x32xf32> to vector<8xf32>
    %83 = vector.shape_cast %82 : vector<8xf32> to vector<8x1xf32>
    %cst_45 = arith.constant 3.200000e+01 : f32
    %84 = vector.broadcast %cst_45 : f32 to vector<8x1xf32>
    %85 = arith.divf %83, %84 : vector<8x1xf32>
    %86 = vector.broadcast %85 : vector<8x1xf32> to vector<8x32xf32>
    %87 = arith.subf %79, %86 : vector<8x32xf32>
    %88 = arith.mulf %87, %87 : vector<8x32xf32>
    %cst_46 = arith.constant dense<0.000000e+00> : vector<8xf32>
    %89 = vector.multi_reduction <add>, %88, %cst_46 [1] : vector<8x32xf32> to vector<8xf32>
    %90 = vector.shape_cast %89 : vector<8xf32> to vector<8x1xf32>
    %cst_47 = arith.constant 0.0322580636 : f32
    %91 = vector.broadcast %cst_47 : f32 to vector<8x1xf32>
    %92 = arith.mulf %90, %91 : vector<8x1xf32>
    %93 = math.sqrt %92 : vector<8x1xf32>
    %94 = vector.broadcast %80 : vector<1x32xf32> to vector<8x32xf32>
    %95 = arith.mulf %94, %87 : vector<8x32xf32>
    %cst_48 = arith.constant 9.99999997E-7 : f32
    %96 = vector.broadcast %cst_48 : f32 to vector<8x1xf32>
    %97 = arith.addf %93, %96 : vector<8x1xf32>
    %98 = tpu.reciprocal %97 {approx = true} : vector<8x1xf32> -> vector<8x1xf32>
    %99 = vector.broadcast %98 : vector<8x1xf32> to vector<8x32xf32>
    %100 = arith.mulf %95, %99 : vector<8x32xf32>
    %101 = vector.broadcast %81 : vector<1x32xf32> to vector<8x32xf32>
    %102 = arith.addf %100, %101 : vector<8x32xf32>
    %c0_49 = arith.constant 0 : index
    %c0_50 = arith.constant 0 : index
    %103 = vector.load %arg13[%c0_49, %c0_50] : memref<32x128xf32, #tpu.memory_space<vmem>>, vector<32x128xf32>
    %cst_51 = arith.constant dense<0.000000e+00> : vector<8x128xf32>
    %104 = tpu.matmul %102, %103, %cst_51 {dimension_numbers = #tpu.dot_dimension_numbers<[1], [0], [0], [1], [0, 0, 1, 1], [], []>} : vector<8x32xf32>, vector<32x128xf32>, vector<8x128xf32> -> vector<8x128xf32>
    %c0_52 = arith.constant 0 : index
    %c0_53 = arith.constant 0 : index
    %105 = vector.load %arg14[%c0_52, %c0_53] : memref<1x128xf32, #tpu.memory_space<vmem>>, vector<1x128xf32>
    %106 = vector.broadcast %105 : vector<1x128xf32> to vector<8x128xf32>
    %107 = arith.addf %104, %106 : vector<8x128xf32>
    %cst_54 = arith.constant 5.000000e-01 : f32
    %108 = vector.broadcast %cst_54 : f32 to vector<8x128xf32>
    %109 = arith.mulf %108, %107 : vector<8x128xf32>
    %cst_55 = arith.constant 4.471500e-02 : f32
    %110 = vector.broadcast %cst_55 : f32 to vector<8x128xf32>
    %111 = arith.mulf %110, %107 : vector<8x128xf32>
    %112 = arith.mulf %111, %107 : vector<8x128xf32>
    %113 = arith.mulf %112, %107 : vector<8x128xf32>
    %114 = arith.addf %107, %113 : vector<8x128xf32>
    %cst_56 = arith.constant 0.797884583 : f32
    %115 = vector.broadcast %cst_56 : f32 to vector<8x128xf32>
    %116 = arith.mulf %115, %114 : vector<8x128xf32>
    %117 = math.tanh %116 : vector<8x128xf32>
    %cst_57 = arith.constant 1.000000e+00 : f32
    %118 = vector.broadcast %cst_57 : f32 to vector<8x128xf32>
    %119 = arith.addf %118, %117 : vector<8x128xf32>
    %120 = arith.mulf %109, %119 : vector<8x128xf32>
    %c0_58 = arith.constant 0 : index
    %c0_59 = arith.constant 0 : index
    %121 = vector.load %arg15[%c0_58, %c0_59] : memref<128x32xf32, #tpu.memory_space<vmem>>, vector<128x32xf32>
    %cst_60 = arith.constant dense<0.000000e+00> : vector<8x32xf32>
    %122 = tpu.matmul %120, %121, %cst_60 {dimension_numbers = #tpu.dot_dimension_numbers<[1], [0], [0], [1], [0, 0, 1, 1], [], []>} : vector<8x128xf32>, vector<128x32xf32>, vector<8x32xf32> -> vector<8x32xf32>
    %c0_61 = arith.constant 0 : index
    %c0_62 = arith.constant 0 : index
    %123 = vector.load %arg16[%c0_61, %c0_62] : memref<1x32xf32, #tpu.memory_space<vmem>>, vector<1x32xf32>
    %124 = vector.broadcast %123 : vector<1x32xf32> to vector<8x32xf32>
    %125 = arith.addf %122, %124 : vector<8x32xf32>
    %126 = arith.addf %79, %125 : vector<8x32xf32>
    %c0_63 = arith.constant 0 : index
    %c0_64 = arith.constant 0 : index
    %c0_65 = arith.constant 0 : index
    %127 = vector.load %arg19[%c0_63, %c0_64, %c0_65] : memref<1x8x32xf32, #tpu.memory_space<vmem>>, vector<1x8x32xf32>
    %128 = vector.shape_cast %127 : vector<1x8x32xf32> to vector<8x32xf32>
    %129 = vector.shape_cast %126 : vector<8x32xf32> to vector<1x8x32xf32>
    tpu.vector_store %arg19[%c0_63, %c0_64, %c0_65], %129 {strides = array<i32>} : memref<1x8x32xf32, #tpu.memory_space<vmem>>, vector<1x8x32xf32>,
    return
  }
  func.func @transform_0(%arg0: i32) -> (i32, i32, i32) {
    %c0_i32 = arith.constant 0 : i32
    %c0_i32_0 = arith.constant 0 : i32
    %c0_i32_1 = arith.constant 0 : i32
    return %arg0, %c0_i32, %c0_i32_0 : i32, i32, i32
  }
  func.func @transform_1(%arg0: i32) -> (i32, i32, i32) {
    %c0_i32 = arith.constant 0 : i32
    %c0_i32_0 = arith.constant 0 : i32
    %c0_i32_1 = arith.constant 0 : i32
    return %arg0, %c0_i32, %c0_i32_0 : i32, i32, i32
  }
  func.func @transform_2(%arg0: i32) -> (i32, i32) {
    %c0_i32 = arith.constant 0 : i32
    %c0_i32_0 = arith.constant 0 : i32
    %c0_i32_1 = arith.constant 0 : i32
    return %c0_i32, %c0_i32_0 : i32, i32
  }
  func.func @transform_3(%arg0: i32) -> (i32, i32) {
    %c0_i32 = arith.constant 0 : i32
    %c0_i32_0 = arith.constant 0 : i32
    %c0_i32_1 = arith.constant 0 : i32
    return %c0_i32, %c0_i32_0 : i32, i32
  }
  func.func @transform_4(%arg0: i32) -> (i32, i32) {
    %c0_i32 = arith.constant 0 : i32
    %c0_i32_0 = arith.constant 0 : i32
    %c0_i32_1 = arith.constant 0 : i32
    return %c0_i32, %c0_i32_0 : i32, i32
  }
  func.func @transform_5(%arg0: i32) -> (i32, i32) {
    %c0_i32 = arith.constant 0 : i32
    %c0_i32_0 = arith.constant 0 : i32
    %c0_i32_1 = arith.constant 0 : i32
    return %c0_i32, %c0_i32_0 : i32, i32
  }
  func.func @transform_6(%arg0: i32) -> (i32, i32) {
    %c0_i32 = arith.constant 0 : i32
    %c0_i32_0 = arith.constant 0 : i32
    %c0_i32_1 = arith.constant 0 : i32
    return %c0_i32, %c0_i32_0 : i32, i32
  }
  func.func @transform_7(%arg0: i32) -> (i32, i32) {
    %c0_i32 = arith.constant 0 : i32
    %c0_i32_0 = arith.constant 0 : i32
    %c0_i32_1 = arith.constant 0 : i32
    return %c0_i32, %c0_i32_0 : i32, i32
  }
  func.func @transform_8(%arg0: i32) -> (i32, i32) {
    %c0_i32 = arith.constant 0 : i32
    %c0_i32_0 = arith.constant 0 : i32
    %c0_i32_1 = arith.constant 0 : i32
    return %c0_i32, %c0_i32_0 : i32, i32
  }
  func.func @transform_9(%arg0: i32) -> (i32, i32) {
    %c0_i32 = arith.constant 0 : i32
    %c0_i32_0 = arith.constant 0 : i32
    %c0_i32_1 = arith.constant 0 : i32
    return %c0_i32, %c0_i32_0 : i32, i32
  }
  func.func @transform_10(%arg0: i32) -> (i32, i32) {
    %c0_i32 = arith.constant 0 : i32
    %c0_i32_0 = arith.constant 0 : i32
    %c0_i32_1 = arith.constant 0 : i32
    return %c0_i32, %c0_i32_0 : i32, i32
  }
  func.func @transform_11(%arg0: i32) -> (i32, i32) {
    %c0_i32 = arith.constant 0 : i32
    %c0_i32_0 = arith.constant 0 : i32
    %c0_i32_1 = arith.constant 0 : i32
    return %c0_i32, %c0_i32_0 : i32, i32
  }
  func.func @transform_12(%arg0: i32) -> (i32, i32) {
    %c0_i32 = arith.constant 0 : i32
    %c0_i32_0 = arith.constant 0 : i32
    %c0_i32_1 = arith.constant 0 : i32
    return %c0_i32, %c0_i32_0 : i32, i32
  }
  func.func @transform_13(%arg0: i32) -> (i32, i32) {
    %c0_i32 = arith.constant 0 : i32
    %c0_i32_0 = arith.constant 0 : i32
    %c0_i32_1 = arith.constant 0 : i32
    return %c0_i32, %c0_i32_0 : i32, i32
  }
  func.func @transform_14(%arg0: i32) -> (i32, i32) {
    %c0_i32 = arith.constant 0 : i32
    %c0_i32_0 = arith.constant 0 : i32
    %c0_i32_1 = arith.constant 0 : i32
    return %c0_i32, %c0_i32_0 : i32, i32
  }
  func.func @transform_15(%arg0: i32) -> (i32, i32) {
    %c0_i32 = arith.constant 0 : i32
    %c0_i32_0 = arith.constant 0 : i32
    %c0_i32_1 = arith.constant 0 : i32
    return %c0_i32, %c0_i32_0 : i32, i32
  }
  func.func @transform_16(%arg0: i32) -> (i32, i32) {
    %c0_i32 = arith.constant 0 : i32
    %c0_i32_0 = arith.constant 0 : i32
    %c0_i32_1 = arith.constant 0 : i32
    return %c0_i32, %c0_i32_0 : i32, i32
  }
  func.func @transform_17(%arg0: i32) -> (i32, i32) {
    %c0_i32 = arith.constant 0 : i32
    %c0_i32_0 = arith.constant 0 : i32
    %c0_i32_1 = arith.constant 0 : i32
    return %c0_i32, %c0_i32_0 : i32, i32
  }
  func.func @transform_18(%arg0: i32) -> (i32, i32, i32) {
    %c0_i32 = arith.constant 0 : i32
    %c0_i32_0 = arith.constant 0 : i32
    %c0_i32_1 = arith.constant 0 : i32
    return %arg0, %c0_i32, %c0_i32_0 : i32, i32, i32
  }
}

</mosaic_0001>

<bundles_post_ra>
// kernel: tpu_custom_call.1
= control target key start
LH: loop header
LB: loop body
LE: loop exit
PB: predicated region body
PF: predicated region fallthrough
CT: control target
= control target key end

     0   :  { %s2810_s0 = inlined_call_operand.hbm [shape: f32[2,8,32], index: 0, kind: input, shape index: {}]   ;;  %s2811_s1 = inlined_call_operand.vmem [shape: f32[2,1,8], index: 1, kind: input, shape index: {}]   ;;  %s2812_s2 = inlined_call_operand.vmem [shape: f32[32,32], index: 2, kind: input, shape index: {}]   ;;  %s2813_s3 = inlined_call_operand.vmem [shape: f32[1,32], index: 3, kind: input, shape index: {}]   ;;  %s2814_s4 = inlined_call_operand.vmem [shape: f32[32,32], index: 4, kind: input, shape index: {}]   ;;  %s2815_s5 = inlined_call_operand.vmem [shape: f32[1,32], index: 5, kind: input, shape index: {}]   ;;  %s2816_s6 = inlined_call_operand.vmem [shape: f32[32,32], index: 6, kind: input, shape index: {}]   ;;  %s2817_s7 = inlined_call_operand.vmem [shape: f32[1,32], index: 7, kind: input, shape index: {}]   ;;  %s2818_s8 = inlined_call_operand.vmem [shape: f32[32,32], index: 8, kind: input, shape index: {}]   ;;  %s2819_s9 = inlined_call_operand.vmem [shape: f32[1,32], index: 9, kind: input, shape index: {}]   ;;  %s2820_s10 = inlined_call_operand.vmem [shape: f32[1,32], index: 10, kind: input, shape index: {}]   ;;  %s2821_s11 = inlined_call_operand.vmem [shape: f32[1,32], index: 11, kind: input, shape index: {}]   ;;  %s2822_s12 = inlined_call_operand.vmem [shape: f32[32,128], index: 12, kind: input, shape index: {}]   ;;  %s2823_s13 = inlined_call_operand.vmem [shape: f32[1,128], index: 13, kind: input, shape index: {}]   ;;  %s2824_s14 = inlined_call_operand.vmem [shape: f32[128,32], index: 14, kind: input, shape index: {}]   ;;  %s2825_s15 = inlined_call_operand.vmem [shape: f32[1,32], index: 15, kind: input, shape index: {}]   ;;  %s2826_s16 = inlined_call_operand.vmem [shape: f32[1,32], index: 16, kind: input, shape index: {}]   ;;  %s2827_s17 = inlined_call_operand.vmem [shape: f32[1,32], index: 17, kind: input, shape index: {}]   ;;  %s2828_s18 = inlined_call_operand.hbm [shape: f32[2,8,32], index: 18, kind: output, shape index: {}]  }
   0x1   :  { %2840 = sst [smem:[#allocation12_spill]] %s2810_s0 }
   0x2   :  { %2841 = sst [smem:[#allocation13_spill]] %s2811_s1 }
   0x3   :  { %2842 = sst [smem:[#allocation14_spill]] %s2812_s2 }
   0x4   :  { %2843 = sst [smem:[#allocation15_spill]] %s2813_s3 }
   0x5   :  { %2844 = sst [smem:[#allocation16_spill]] %s2823_s13 }
   0x6   :  { %2845 = sst [smem:[#allocation17_spill]] %s2825_s15 }
   0x7   :  { %2846 = sst [smem:[#allocation18_spill]] %s2828_s18 }
   0x8   :  { %23 = vsyncpa [#allocation3], 0 }
   0x9   :  { %25 = vsyncpa [#allocation3 + $0x1], 0 }
   0xa   :  { %26 = vsyncpa [#allocation4], 0 }
   0xb   :  { %28 = vsyncpa [#allocation4 + $0x1], 0  ;;  %s2429_s27 = smov 0   ;;  %s2431_s28 = smov 0  }
   0xc   :  { %s2433_s29 = smov 0   ;;  %s2435_s30 = smov 0  }
   0xd LB: > { %2847 = sst [smem:[#allocation8_spill]] %s2314_s27  ;;  %s2450_s0 = sadd.s32 4294967295, %s2326_s30   ;;  %s2326_s30 = sphi %s2435_s30, %s2872_s30   ;;  %s2322_s29 = sphi %s2433_s29, %s2876_s29   ;;  %s2318_s28 = sphi %s2431_s28, %s2875_s28   ;;  %s2314_s27 = sphi %s2429_s27, %s2874_s27  }
   0xe   : > { %s1887_s19 = sadd.s32 4294967294, %s2326_s30   ;;  %s2454_s1 = sadd.s32 1, %s2326_s30  }
   0xf   : > { %2848 = sst [smem:[#allocation9_spill]] %s2454_s1  ;;  %s41_s20 = sadd.s32 1, %s2322_s29 }
  0x10   : > { %s38_s21 = ssub.s32 %s2326_s30, %s2454_s1  ;;  %p48_p0 = scmp.ne.s32.totalorder %s2322_s29, %s2318_s28 }
  0x11   : > { %p39_p1 = scmp.eq.s32.totalorder %s38_s21, 0  ;;  %p49_p2 = scmp.eq.s32.totalorder %s2326_s30, 0 }
  0x12   : > { %p54_p3 = scmp.ne.s32.totalorder %s2318_s28, %s2314_s27  ;;  %p55_p4 = scmp.eq.s32.totalorder %s2450_s0, 0 }
  0x13   : > { %s2466_s22 = scalar_select %p39_p1, %s2322_s29, %s41_s20  }
  0x14   : > { %p2468_p5 = por %p49_p2, %p48_p0  ;;  %p2472_p6 = por %p55_p4, %p54_p3 }
  0x15   : > { %2849 = sst [smem:[#allocation10_spill]] %s2466_s22  ;;  %p440_p7 = scmp.eq.s32.totalorder %s2450_s0, 1 }
  0x16   : > { %p446_p8 = scmp.eq.s32.totalorder %s1887_s19, 1  ;;  %p2174_p10 = scmp.lt.s32.totalorder %s2326_s30, 2 }
  0x17   : > { %p2479_p11 = por %p440_p7, %p48_p0  ;;  %s514_s26 = sand.u32 1, %s2322_s29  }
  0x18   : > { %p2483_p12 = por %p446_p8, %p54_p3  ;;  %s1891_s20 = sshll.u32 %s2326_s30, 7 }
  0x19   : > { %s2852_s24 = scalar_select %p2479_p11, 1, 0 }
  0x1a   : > { %s2854_s25 = scalar_select %p2483_p12, 1, 0 }
  0x1b   : > { %2853 = sst [smem:[#allocation11_spill]] %s2852_s24  ;;  %s1890_s21 = sshll.u32 %s514_s26, 3 }
  0x1c   : > { %s2855_s27 = sld [smem:[#allocation12_spill]]  ;;  %s518_s19 = scalar_lea.vmem [#allocation2], %s1890_s21 }
  0x1d   : > { %s525_s13 = sshll.u32 %s518_s19, 4  ;;  %p2496_p13 = pnand %p2174_p10, %p2468_p5  ;;  %s2500_s13 = int_to_ptr.vmem [resolvable:$true] %s525_s13 }
  0x1e   : > { %s515_s1 = scalar_lea.sflag [#allocation3], %s514_s26 }
  0x1f   : > { %p2232_p3 = pneg %p2496_p13 }
  0x22   : > { %s2856_s18 = smov %s2855_s27  ;;  %s2492_s15 = scalar_lea.hbm %s2855_s27, %s1891_s20 }
  0x23   : > { %s2230_s27 = scalar_lea.hbm %s2492_s15, 128  ;;  %s2235_s20 = scalar_lea.hbm %s2856_s18, 256 }
  0x24   : > { %p2231_p2 = scmp.ne.s32.totalorder %s2492_s15, %s2230_s27  ;;  %p2236_p5 = scmp.lt.u32.totalorder %s2492_s15, %s2856_s18 }
  0x25   : > { %p2237_p8 = scmp.lt.u32.totalorder %s2235_s20, %s2230_s27  ;;  %p2239_p9 = scmp.lt.u32.totalorder %s2230_s27, %s2492_s15 }
  0x26   : > { %p2233_p4 = pnand %p2232_p3, %p2231_p2 }
  0x27   : > { %p2238_p10 = por %p2237_p8, %p2236_p5 }
  0x28   : > { %p2234_p7 = pneg %p2233_p4 }
  0x29   : > { %p2240_p0 = por %p2239_p9, %p2238_p10 }
  0x2b   : > { %p2241_p1 = pnand %p2240_p0, %p2234_p7 }
  0x2d   : > { %2244 = shalt.err (!%p2241_p1)
}
  0x2e   : > { %s2245_s26 = scalar_lea.vmem %s2500_s13, 128  ;;  %s2328_s22 = smov [#allocation2]  }
  0x2f   : > { %p2246_p2 = scmp.ne.s32.totalorder %s2500_s13, %s2245_s26  ;;  %s2250_s2 = sshll.u32 %s2328_s22, 4  ;;  %s2251_s2 = int_to_ptr.vmem [resolvable:$false] %s2250_s2 }
  0x30   : > { %s2252_s21 = scalar_lea.vmem %s2251_s2, 256  ;;  %p2253_p11 = scmp.lt.s32.totalorder %s2500_s13, %s2251_s2 }
  0x31   : > { %p2248_p4 = pnand %p2246_p2, %p2232_p3  ;;  %p2254_p5 = scmp.lt.s32.totalorder %s2252_s21, %s2245_s26 }
  0x33   : > { %p2249_p12 = pneg %p2248_p4  ;;  %p2255_p8 = por %p2254_p5, %p2253_p11 }
  0x35   : > { %p2256_p9 = pnand %p2255_p8, %p2249_p12 }
  0x37   : > { %2259 = shalt.err (!%p2256_p9)
}
  0x38   : > { %2169 = dma.hbm_to_vmem [thread:$0]  (!%p2496_p13), %s2492_s15, 128, %s2500_s13, %s515_s1  }
  0x39   : > { %p2858_p0 = scmp.lt.s32.totalorder %s2326_s30, 3  ;;  %p2859_p1 = scmp.ge.s32.totalorder %s2326_s30, 1 }
  0x3b   : > { %p537_p3 = pnand %p2859_p1, %p2858_p0 }
  0x3c   : > { %s2534_s27 = sand.u32 (!%p537_p3), 1, %s2318_s28  }
  0x3d   : > { %540 = sbr.rel (%p537_p3) target bundleno = 2924 (0xb6c), region = 92  ;;  %s2838_s20 = sshll.u32 (!%p537_p3), %s2534_s27, 3 }
  0x3e   : > { %s543_s19 = scalar_lea.sflag (!%p537_p3), [#allocation3], %s2534_s27  ;;  %s546_s24 = scalar_lea.vmem (!%p537_p3), [#allocation2], %s2838_s20 }
  0x44   : > { %2305 = dma.done.wait (%p2472_p6), %s543_s19, 128  }
  0x45   : > { %2307 = vsyncadd (%p2472_p6), %s543_s19, 4294967168  ;;  %vm610_vm0 = vcmask 261120   ;;  %v2544_v0 = vld [vmem:[%s546_s24] sm:$0xff]  ;;  %s2860_s1 = sld [smem:[#allocation14_spill]]  ;;  %v2329_v10 = vmov 0.0|0.0   ;;  %vm2330_vm1 = vmmov 0  }
  0x46   : > { %v611_v1 = vsel %vm610_vm0, %v2544_v0, 0.0  ;;  %2094 = vmatprep.subr.bf16.mxu1 %v2329_v10  ;;  %v2331_v13 = vmov 0.0   ;;  %2118 = vmatprep.subr.bf16.mxu0 %v2329_v10  ;;  %v1895_v23 = vld [vmem:[%s2820_s10] ss:$0 sm:$0xff]  ;;  %v732_v26 = vld [vmem:[%s2814_s4 + $0x8] sm:$0xff]  ;;  %v733_v32 = vld [vmem:[%s2814_s4 + $0x10] sm:$0xff] }
  0x47   : > { %612 = vadd.xlane.f32.xlu0 %v611_v1  ;;  %1984 = vmatprep.mubr.msk.f32.mxu1 %vm2330_vm1, %v2331_v13  ;;  %v731_v25 = vld [vmem:[%s2814_s4] sm:$0xff]  ;;  %v734_v33 = vld [vmem:[%s2814_s4 + $0x18] sm:$0xff]  ;;  %v813_v36 = vld [vmem:[%s2816_s6 + $0x8] sm:$0xff]  ;;  %s2861_s3 = sld [smem:[#allocation15_spill]]  ;;  %vm1053_vm4 = vcmask 130048   ;;  %p602_p6 = scmp.lt.s32.totalorder %s2450_s0, 1  ;;  %v1201_v1 = vlaneseq }
  0x48   : > { %2027 = vmatprep.mubr.msk.f32.mxu0 %vm2330_vm1, %v2331_v13  ;;  %v1896_v28 = vld [vmem:[%s2821_s11] ss:$0 sm:$0xff]  ;;  %v2101_v30 = vpack.c.bf16 %v732_v26, %v731_v25  ;;  %v2104_v34 = vpack.c.bf16 %v734_v33, %v733_v32  ;;  %v814_v38 = vld [vmem:[%s2816_s6 + $0x10] sm:$0xff]  ;;  %v815_v39 = vld [vmem:[%s2816_s6 + $0x18] sm:$0xff]  ;;  %s2862_s2 = sld [smem:[#allocation13_spill]]  ;;  %vm1208_vm7 = vcmask 64512  }
  0x49   : > { %v812_v35 = vld [vmem:[%s2816_s6] sm:$0xff]  ;;  %v2110_v40 = vpack.c.bf16 %v815_v39, %v814_v38  ;;  %s603_s26 = scalar_select %p602_p6, %s2450_s0, 1  ;;  %vm2120_vm8 = vmpackc.low %vm1208_vm7, %vm1208_vm7 }
  0x4a   : > { %v2107_v37 = vpack.c.bf16 %v813_v36, %v812_v35  ;;  %v1899_v48 = vld [vmem:[%s2815_s5] ss:$0 sm:$0xff]  ;;  %s2865_s13 = sld [smem:[#allocation17_spill]]  ;;  %s1919_s15 = sshll.u32 %s2450_s0, 7 }
  0x4b   : > { %v646_v7 = vld [vmem:[%s2860_s1] sm:$0xff]  ;;  %v647_v8 = vld [vmem:[%s2860_s1 + $0x8] sm:$0xff]  ;;  %v648_v9 = vld [vmem:[%s2860_s1 + $0x10] sm:$0xff]  ;;  %s2866_s23 = sshll.u32 %s2534_s27, 3  ;;  %s1795_s0 = scalar_lea.sflag [#allocation4], %s2534_s27 }
  0x4c   : > { %v2095_v11 = vpack.c.bf16 %v647_v8, %v646_v7  ;;  %v649_v12 = vld [vmem:[%s2860_s1 + $0x18] sm:$0xff]  ;;  %s2867_s1 = sld [smem:[#allocation18_spill]]  ;;  %s2333_s24 = smov [#allocation5]  }
  0x4d   : > { %v2098_v14 = vpack.c.bf16 %v649_v12, %v648_v9  ;;  %v1897_v41 = vld [vmem:[%s2861_s3] ss:$0 sm:$0xff] }
  0x4e   : > { %2096 = vmatpush3.bf16.msra.mxu1 %v2095_v11  ;;  %s604_s21 = scalar_lea.vmem %s2862_s2, %s603_s26  ;;  %s2863_s2 = sld [smem:[#allocation16_spill]] }
  0x4f   : > { %2097 = vmatprep.subr.bf16.mxu1 %v2329_v10  ;;  %s601_s26 = scalar_lea.vmem [#allocation5], %s2866_s23 }
  0x50   : > { %s1808_s22 = sshll.u32 %s601_s26, 4  ;;  %s2767_s22 = int_to_ptr.vmem [resolvable:$true] %s1808_s22 }
  0x51   : > { %s2260_s19 = scalar_lea.vmem %s2767_s22, 128 }
  0x52   : > { %2099 = vmatpush3.bf16.msra.mxu1 %v2098_v14  ;;  %s2765_s3 = scalar_lea.hbm %s2867_s1, %s1919_s15  ;;  %p2261_p11 = scmp.ne.s32.totalorder %s2767_s22, %s2260_s19 }
  0x53   : > { %2100 = vmatprep.subr.bf16.mxu1 %v2329_v10 }
  0xd4   : > { %v613_v2 = vpop.xlane.xlu0 %612 }
  0xd5   : > { %v615_v3 = vmul.f32 0.03125, %v613_v2  ;;  %v606_v2 = vld [vmem:[%s604_s21] sm:$0x1]  ;;  %s2864_s21 = sld [smem:[#allocation11_spill]] }
  0xd6   : > { %vm607_vm5 = vcmp.eq.f32.partialorder %v606_v2, 0.0 }
  0xd7   : > { %v616_v4 = vsub.f32 %v2544_v0, %v615_v3  ;;  %v1202_v3 = vshrl.u32 %v1201_v1, 7 }
  0xd9   : > { %v617_v5 = vmul.f32 %v616_v4, %v616_v4  ;;  %v635_v24 = vmul.f32 %v1895_v23, %v616_v4  ;;  %v1203_v4 = vsub.s32 0, %v1202_v3 }
  0xdb   : > { %v618_v6 = vsel %vm610_vm0, %v617_v5, 0.0  ;;  %v2332_v5 = vmov 0   ;;  %p2868_p12 = scmp.ne.s32.totalorder %s2864_s21, 0 }
  0xdc   : > { %619 = vadd.xlane.f32.xlu0 %v618_v6  ;;  %v1200_v6 = vsel %vm607_vm5, 1, %v2332_v5  ;;  %v1608_v5 = vld [vmem:[%s2822_s12 + $0x10] sm:$0xff] }
  0xdd   : > { %v1204_v7 = vrot.slane %v1200_v6, %v1203_v4  ;;  %v1606_v4 = vld [vmem:[%s2822_s12] sm:$0xff]  ;;  %p2262_p13 = pnand %p2261_p11, %p2868_p12 }
  0xdf   : > { %vm1205_vm6 = vcmp.eq.s32.totalorder %v1204_v7, 1  ;;  %v1609_v7 = vld [vmem:[%s2822_s12 + $0x18] sm:$0xff]  ;;  %p2263_p7 = pneg %p2262_p13 }
 0x169   : > { %v620_v15 = vpop.xlane.xlu0 %619 }
 0x16a   : > { %v621_v16 = vmul.f32 0.032258064, %v620_v15 }
 0x16c   : > { %2212 = vrsqrt.f32 %v621_v16  ;;  %vm624_vm2 = vcmp.eq.f32.partialorder %v621_v16, inf  ;;  %v627_v19 = vand.u32 2147483648, %v621_v16  ;;  %vm626_vm3 = vcmp.eq.f32.partialorder %v621_v16, 0.0 }
 0x176   : > { %v2213_v17 = vpop.eup %2212 }
 0x177   : > { %v623_v18 = vmul.f32 %v2213_v17, %v621_v16 }
 0x179   : > { %v625_v20 = vsel %vm624_vm2, %v621_v16, %v623_v18 }
 0x17a   : > { %v628_v21 = vsel %vm626_vm3, %v627_v19, %v625_v20 }
 0x17b   : > { %v636_v22 = vadd.f32 1e-06, %v628_v21 }
 0x17d   : > { %2214 = vrcp.f32 %v636_v22 }
 0x187   : > { %v2215_v27 = vpop.eup %2214 }
 0x188   : > { %v638_v29 = vmul.f32 %v2215_v27, %v635_v24 }
 0x18a   : > { %v645_v31 = vadd.f32 %v1896_v28, %v638_v29  ;;  %v1901_v28 = vld [vmem:[%s2817_s7] ss:$0 sm:$0xff] }
 0x18c   : > { %1985 = vmatmul.mubr.msk.f32.vlgmr.msra.gmra.mrb[0].mxu1 %vm610_vm0, %v645_v31 }
 0x18d   : > { %2102 = vmatpush3.bf16.msra.mxu1 %v2101_v30  ;;  %1995 = vmatprep.mubr.msk.f32.mxu1 %vm2330_vm1, %v2331_v13 }
 0x18e   : > { %2103 = vmatprep.subr.bf16.mxu1 %v2329_v10 }
 0x191   : > { %2105 = vmatpush3.bf16.msra.mxu1 %v2104_v34 }
 0x192   : > { %2106 = vmatprep.subr.bf16.mxu1 %v2329_v10 }
 0x194   : > { %1996 = vmatmul.mubr.msk.f32.vlgmr.msra.gmra.mrb[2].mxu1 %vm610_vm0, %v645_v31 }
 0x195   : > { %2108 = vmatpush3.bf16.msra.mxu1 %v2107_v37  ;;  %2006 = vmatprep.mubr.msk.f32.mxu1 %vm2330_vm1, %v2331_v13 }
 0x196   : > { %2109 = vmatprep.subr.bf16.mxu1 %v2329_v10 }
 0x199   : > { %2111 = vmatpush3.bf16.msra.mxu1 %v2110_v40 }
 0x19a   : > { %2112 = vmatprep.subr.bf16.mxu1 %v2329_v10 }
 0x19c   : > { %2007 = vmatmul.mubr.msk.f32.vlgmr.msra.gmra.mrb[4].mxu1 %vm610_vm0, %v645_v31 }
 0x19d   : > { %2013 = vmatprep.mubr.msk.f32.mxu1 %vm2330_vm1, %v2331_v13 }
 0x25f   : > { %v726_v42 = vpop.f32.mrb[0].mxu1 }
 0x260   : > { %v1986_v43 = vpop.f32.mrb[1].mxu1  ;;  %v727_v44 = vadd.f32 %v1897_v41, %v726_v42 }
 0x262   : > { %v730_v45 = vmul.f32 0.25, %v727_v44 }
 0x264   : > { %893 = vxpose.xlu1.b32.start.end [1/1] (short) (narrow) %v730_v45, 32 }
 0x267   : > { %v808_v46 = vpop.f32.mrb[2].mxu1 }
 0x268   : > { %v1997_v47 = vpop.f32.mrb[3].mxu1  ;;  %v809_v49 = vadd.f32 %v1899_v48, %v808_v46  ;;  %v1485_v46 = vld [vmem:[%s2818_s8] sm:$0xff]  ;;  %v1487_v48 = vld [vmem:[%s2818_s8 + $0x10] sm:$0xff] }
 0x269   : > { %v1486_v47 = vld [vmem:[%s2818_s8 + $0x8] sm:$0xff] }
 0x26f   : > { %v2619_v50 = vpop.f32.mrb[4].mxu1 }
 0x270   : > { %v2008_v51 = vpop.f32.mrb[5].mxu1  ;;  %v890_v29 = vadd.f32 %v1901_v28, %v2619_v50  ;;  %v1488_v50 = vld [vmem:[%s2818_s8 + $0x18] sm:$0xff]  ;;  %v1701_v28 = vld [vmem:[%s2824_s14 + $0x10] sm:$0xff] }
 0x271   : > { %989 = vxpose.xlu1.b32.start.end [1/1] (short) (narrow) %v809_v49, 32  ;;  %v2127_v49 = vpack.c.bf16 %v1486_v47, %v1485_v46  ;;  %v2130_v51 = vpack.c.bf16 %v1488_v50, %v1487_v48  ;;  %v1713_v46 = vld [vmem:[%s2824_s14 + $0x70] sm:$0xff]  ;;  %v1714_v47 = vld [vmem:[%s2824_s14 + $0x78] sm:$0xff] }
 0x272   : > { %v2160_v48 = vpack.c.bf16 %v1714_v47, %v1713_v46 }
 0x2e4   : > { %v909_v52 = vpop.trf.xlu1 }
 0x2e5   : > { %925 = vxpose.xlu0.b32.start [1/2] (short) (narrow) %v909_v52, 8 }
 0x2e8   : > { %v910_v53 = vpop.trf.xlu1 }
 0x2e9   : > { %926 = vxpose.xlu0.b32.end [2/2] (short) (narrow) %v910_v53, 8 }
 0x2ec   : > { %v911_v54 = vpop.trf.xlu1 }
 0x2ed   : > { %957 = vxpose.xlu1.b32.start [1/2] (short) (narrow) %v911_v54, 8 }
 0x2f0   : > { %v912_v55 = vpop.trf.xlu1 }
 0x2f1   : > { %958 = vxpose.xlu1.b32.end [2/2] (short) (narrow) %v912_v55, 8 }
 0x2f4   : > { %v1005_v56 = vpop.trf.xlu1 }
 0x2f8   : > { %v1006_v57 = vpop.trf.xlu1 }
 0x2f9   : > { %v2113_v58 = vpack.c.bf16 %v1006_v57, %v1005_v56  ;;  %v1911_v57 = vld [vmem:[%s2819_s9] ss:$0 sm:$0xff] }
 0x2fb   : > { %2114 = vmatpush3.bf16.msra.mxu1 %v2113_v58 }
 0x2fc   : > { %2115 = vmatprep.subr.bf16.mxu1 %v2329_v10  ;;  %v1007_v59 = vpop.trf.xlu1 }
 0x300   : > { %v1008_v60 = vpop.trf.xlu1 }
 0x301   : > { %v2116_v61 = vpack.c.bf16 %v1008_v60, %v1007_v59 }
 0x365   : > { %v941_v62 = vpop.trf.xlu0 }
 0x366   : > { %2014 = vmatmul.mubr.msk.f32.vlgmr.msra.gmra.mrb[6].mxu1 %vm1053_vm4, %v941_v62 }
 0x367   : > { %2117 = vmatpush3.bf16.msra.mxu1 %v2116_v61  ;;  %2020 = vmatprep.mubr.msk.f32.mxu1 %vm2330_vm1, %v2331_v13 }
 0x368   : > { %2122 = vmatprep.subr.bf16.mxu1 %v2329_v10 }
 0x36d   : > { %v973_v63 = vpop.trf.xlu1 }
 0x36e   : > { %2021 = vmatmul.mubr.msk.f32.vlgmr.msra.gmra.mrb[8].mxu1 %vm1053_vm4, %v973_v63 }
 0x36f   : > { %2034 = vmatprep.mubr.msk.f32.mxu1 %vm2330_vm1, %v2331_v13 }
 0x439   : > { %v1123_v8 = vpop.f32.mrb[6].mxu1 }
 0x43a   : > { %v1206_v9 = vsel %vm1205_vm6, -1e+09, %v1123_v8  ;;  %v2015_v11 = vpop.f32.mrb[7].mxu1  ;;  %v2136_v8 = vpack.c.bf16 %v1609_v7, %v1608_v5 }
 0x43b   : > { %v1209_v12 = vsel %vm1208_vm7, %v1206_v9, -inf  ;;  %v1700_v11 = vld [vmem:[%s2824_s14 + $0x8] sm:$0xff] }
 0x43c   : > { %1210 = vmax.xlane.f32.xlu1 %v1209_v12 }
 0x441   : > { %v1196_v14 = vpop.f32.mrb[8].mxu1 }
 0x442   : > { %v1207_v15 = vsel %vm1205_vm6, -1e+09, %v1196_v14  ;;  %v2022_v16 = vpop.f32.mrb[9].mxu1 }
 0x443   : > { %v1212_v17 = vsel %vm1208_vm7, %v1207_v15, -inf }
 0x444   : > { %1213 = vmax.xlane.f32.xlu0 %v1212_v17 }
 0x4c9   : > { %v1211_v18 = vpop.xlane.xlu1 %1210 }
 0x4ca   : > { %v1215_v19 = vsub.f32 %v1206_v9, %v1211_v18  ;;  %v1699_v9 = vld [vmem:[%s2824_s14] sm:$0xff] }
 0x4cb   : > { %v2139_v12 = vpack.c.bf16 %v1700_v11, %v1699_v9 }
 0x4cc   : > { %v1217_v20 = vmul.f32 1.442695, %v1215_v19 }
 0x4ce   : > { %2216 = vpow2.f32 %v1217_v20 }
 0x4d1   : > { %v1214_v21 = vpop.xlane.xlu0 %1213 }
 0x4d2   : > { %v1216_v22 = vsub.f32 %v1207_v15, %v1214_v21 }
 0x4d4   : > { %v1219_v23 = vmul.f32 1.442695, %v1216_v22  ;;  %v1913_v22 = vld [vmem:[%s2826_s16] ss:$0 sm:$0xff] }
 0x4d6   : > { %2218 = vpow2.f32 %v1219_v23 }
 0x4d8   : > { %v2217_v24 = vpop.eup %2216 }
 0x4d9   : > { %v1221_v25 = vsel %vm1208_vm7, %v2217_v24, 0.0 }
 0x4da   : > { %1222 = vadd.xlane.f32.xlu1 %v1221_v25  ;;  %v1914_v25 = vld [vmem:[%s2827_s17] ss:$0 sm:$0xff] }
 0x4e0   : > { %v2219_v26 = vpop.eup %2218 }
 0x4e1   : > { %v1224_v27 = vsel %vm1208_vm7, %v2219_v26, 0.0 }
 0x4e2   : > { %1225 = vadd.xlane.f32.xlu1 %v1224_v27 }
 0x515   : > { %1021 = vxpose.xlu1.b32.start.end [1/1] (short) (narrow) %v890_v29, 32  ;;  %v1702_v29 = vld [vmem:[%s2824_s14 + $0x18] sm:$0xff] }
 0x567   : > { %v1223_v30 = vpop.xlane.xlu1 %1222 }
 0x568   : > { %2220 = vrcp.f32 %v1223_v30  ;;  %v2142_v30 = vpack.c.bf16 %v1702_v29, %v1701_v28 }
 0x56f   : > { %v1226_v31 = vpop.xlane.xlu1 %1225 }
 0x570   : > { %2222 = vrcp.f32 %v1226_v31  ;;  %v1703_v31 = vld [vmem:[%s2824_s14 + $0x20] sm:$0xff] }
 0x572   : > { %v2221_v36 = vpop.eup %2220 }
 0x573   : > { %v1229_v38 = vmul.f32 %v2221_v36, %v2217_v24 }
 0x57a   : > { %v2223_v40 = vpop.eup %2222 }
 0x57b   : > { %v1230_v41 = vmul.f32 %v2223_v40, %v2219_v26  ;;  %v1709_v40 = vld [vmem:[%s2824_s14 + $0x50] sm:$0xff] }
 0x595   : > { %v1037_v32 = vpop.trf.xlu1 }
 0x599   : > { %v1038_v33 = vpop.trf.xlu1 }
 0x59a   : > { %v2119_v34 = vpack.c.bf16 %v1038_v33, %v1037_v32  ;;  %v1704_v32 = vld [vmem:[%s2824_s14 + $0x28] sm:$0xff] }
 0x59b   : > { %v2145_v33 = vpack.c.bf16 %v1704_v32, %v1703_v31 }
 0x59c   : > { %2121 = vmatpush3.bf16.xpose.msk.msra.mxu0 %vm2120_vm8, %v2119_v34  ;;  %v1705_v34 = vld [vmem:[%s2824_s14 + $0x30] sm:$0xff] }
 0x59d   : > { %v1039_v35 = vpop.trf.xlu1  ;;  %2126 = vmatprep.subr.bf16.mxu0 %v2329_v10 }
 0x5a1   : > { %v1040_v37 = vpop.trf.xlu1 }
 0x5a2   : > { %v2123_v39 = vpack.c.bf16 %v1040_v37, %v1039_v35  ;;  %v1706_v35 = vld [vmem:[%s2824_s14 + $0x38] sm:$0xff]  ;;  %v1707_v37 = vld [vmem:[%s2824_s14 + $0x40] sm:$0xff] }
 0x5a3   : > { %2028 = vmatmul.mubr.msk.f32.vlgmr.msra.gmra.mrb[0].mxu0 %vm1208_vm7, %v1229_v38  ;;  %v2148_v36 = vpack.c.bf16 %v1706_v35, %v1705_v34  ;;  %v1708_v38 = vld [vmem:[%s2824_s14 + $0x48] sm:$0xff] }
 0x5a4   : > { %2125 = vmatpush3.bf16.xpose.msk.msra.mxu1 %vm2120_vm8, %v2123_v39  ;;  %2045 = vmatprep.mubr.msk.f32.mxu0 %vm2330_vm1, %v2331_v13  ;;  %v2151_v39 = vpack.c.bf16 %v1708_v38, %v1707_v37 }
 0x5a5   : > { %2132 = vmatprep.subr.bf16.mxu1 %v2329_v10  ;;  %2128 = vmatpush3.bf16.msra.mxu0 %v2127_v49  ;;  %v1915_v49 = vld [vmem:[%s2863_s2] ss:$0 sm:$0xff] }
 0x5a6   : > { %2129 = vmatprep.subr.bf16.mxu0 %v2329_v10 }
 0x5a9   : > { %2131 = vmatpush3.bf16.msra.mxu0 %v2130_v51 }
 0x5aa   : > { %2138 = vmatprep.subr.bf16.mxu0 %v2329_v10 }
 0x5ab   : > { %2035 = vmatmul.mubr.msk.f32.vlgmr.msra.gmra.mrb[10].mxu1 %vm1208_vm7, %v1230_v41  ;;  %v1710_v41 = vld [vmem:[%s2824_s14 + $0x58] sm:$0xff] }
 0x5ac   : > { %2056 = vmatprep.mubr.msk.f32.mxu1 %vm2330_vm1, %v2331_v13 }
 0x676   : > { %v1306_v42 = vpop.f32.mrb[0].mxu0 }
 0x677   : > { %1389 = vxpose.xlu0.b32.start.end [1/1] (short) (narrow) %v1306_v42, 16  ;;  %v2029_v43 = vpop.f32.mrb[1].mxu0  ;;  %v2154_v42 = vpack.c.bf16 %v1710_v41, %v1709_v40 }
 0x678   : > { %v1711_v43 = vld [vmem:[%s2824_s14 + $0x60] sm:$0xff] }
 0x67e   : > { %v1385_v44 = vpop.f32.mrb[10].mxu1 }
 0x67f   : > { %1421 = vxpose.xlu1.b32.start.end [1/1] (short) (narrow) %v1385_v44, 16  ;;  %v2036_v45 = vpop.f32.mrb[11].mxu1  ;;  %v1712_v44 = vld [vmem:[%s2824_s14 + $0x68] sm:$0xff] }
 0x680   : > { %v2157_v45 = vpack.c.bf16 %v1712_v44, %v1711_v43 }
 0x6f7   : > { %v1405_v52 = vpop.trf.xlu0 }
 0x6f8   : > { %1453 = vxpose.xlu1.b32.start [1/4] (short) (narrow) %v1405_v52, 8 }
 0x6fb   : > { %v1406_v53 = vpop.trf.xlu0 }
 0x6fc   : > { %1454 = vxpose.xlu1.b32.cont [2/4] (short) (narrow) %v1406_v53, 8 }
 0x6ff   : > { %v1437_v54 = vpop.trf.xlu1 }
 0x700   : > { %1455 = vxpose.xlu1.b32.cont [3/4] (short) (narrow) %v1437_v54, 8 }
 0x703   : > { %v1438_v55 = vpop.trf.xlu1 }
 0x704   : > { %1456 = vxpose.xlu1.b32.end [4/4] (short) (narrow) %v1438_v55, 8 }
 0x778   : > { %v1469_v56 = vpop.trf.xlu1 }
 0x779   : > { %2046 = vmatmul.mubr.msk.f32.vlgmr.msra.gmra.mrb[2].mxu0 %vm610_vm0, %v1469_v56 }
 0x77a   : > { %2091 = vmatprep.mubr.msk.f32.mxu0 %vm2330_vm1, %v2331_v13  ;;  %2140 = vmatpush3.bf16.msra.mxu0 %v2139_v12 }
 0x77b   : > { %2141 = vmatprep.subr.bf16.mxu0 %v2329_v10 }
 0x77e   : > { %2143 = vmatpush3.bf16.msra.mxu0 %v2142_v30 }
 0x77f   : > { %2144 = vmatprep.subr.bf16.mxu0 %v2329_v10 }
 0x782   : > { %2146 = vmatpush3.bf16.msra.mxu0 %v2145_v33 }
 0x783   : > { %2147 = vmatprep.subr.bf16.mxu0 %v2329_v10 }
 0x786   : > { %2149 = vmatpush3.bf16.msra.mxu0 %v2148_v36 }
 0x787   : > { %2150 = vmatprep.subr.bf16.mxu0 %v2329_v10 }
 0x78a   : > { %2152 = vmatpush3.bf16.msra.mxu0 %v2151_v39 }
 0x78b   : > { %2153 = vmatprep.subr.bf16.mxu0 %v2329_v10 }
 0x78e   : > { %2155 = vmatpush3.bf16.msra.mxu0 %v2154_v42 }
 0x78f   : > { %2156 = vmatprep.subr.bf16.mxu0 %v2329_v10 }
 0x792   : > { %2158 = vmatpush3.bf16.msra.mxu0 %v2157_v45 }
 0x793   : > { %2159 = vmatprep.subr.bf16.mxu0 %v2329_v10 }
 0x796   : > { %2161 = vmatpush3.bf16.msra.mxu0 %v2160_v48 }
 0x84c   : > { %v1565_v58 = vpop.f32.mrb[2].mxu0 }
 0x84d   : > { %v1566_v59 = vadd.f32 %v1911_v57, %v1565_v58  ;;  %v2047_v60 = vpop.f32.mrb[3].mxu0 }
 0x84f   : > { %v2671_v61 = vadd.f32 %v1566_v59, %v2544_v0  ;;  %v1607_v0 = vld [vmem:[%s2822_s12 + $0x8] sm:$0xff] }
 0x850   : > { %v2133_v6 = vpack.c.bf16 %v1607_v0, %v1606_v4 }
 0x851   : > { %v1572_v62 = vsel %vm610_vm0, %v2671_v61, 0.0 }
 0x852   : > { %1573 = vadd.xlane.f32.xlu0 %v1572_v62  ;;  %2134 = vmatpush3.bf16.msra.mxu1 %v2133_v6  ;;  %v1917_v62 = vld [vmem:[%s2865_s13] ss:$0 sm:$0xff]  ;;  %s2264_s13 = sshll.u32 %s2333_s24, 4  ;;  %s2265_s13 = int_to_ptr.vmem [resolvable:$false] %s2264_s13 }
 0x853   : > { %2135 = vmatprep.subr.bf16.mxu1 %v2329_v10  ;;  %s2266_s23 = scalar_lea.vmem %s2265_s13, 256  ;;  %p2267_p10 = scmp.lt.s32.totalorder %s2767_s22, %s2265_s13 }
 0x854   : > { %p2268_p2 = scmp.lt.s32.totalorder %s2266_s23, %s2260_s19 }
 0x856   : > { %2137 = vmatpush3.bf16.msra.mxu1 %v2136_v8  ;;  %p2269_p4 = por %p2268_p2, %p2267_p10 }
 0x858   : > { %p2270_p5 = pnand %p2269_p4, %p2263_p7 }
 0x8df   : > { %v1574_v63 = vpop.xlane.xlu0 %1573 }
 0x8e0   : > { %v1575_v1 = vmul.f32 0.03125, %v1574_v63 }
 0x8e2   : > { %v1576_v2 = vsub.f32 %v2671_v61, %v1575_v1 }
 0x8e4   : > { %v1577_v3 = vmul.f32 %v1576_v2, %v1576_v2  ;;  %v1595_v23 = vmul.f32 %v1913_v22, %v1576_v2 }
 0x8e6   : > { %v1578_v13 = vsel %vm610_vm0, %v1577_v3, 0.0 }
 0x8e7   : > { %1579 = vadd.xlane.f32.xlu1 %v1578_v13 }
 0x974   : > { %v1580_v14 = vpop.xlane.xlu1 %1579 }
 0x975   : > { %v1581_v15 = vmul.f32 0.032258064, %v1580_v14 }
 0x977   : > { %2224 = vrsqrt.f32 %v1581_v15  ;;  %vm1584_vm9 = vcmp.eq.f32.partialorder %v1581_v15, inf  ;;  %v1587_v18 = vand.u32 2147483648, %v1581_v15  ;;  %vm1586_vm10 = vcmp.eq.f32.partialorder %v1581_v15, 0.0 }
 0x981   : > { %v2225_v16 = vpop.eup %2224 }
 0x982   : > { %v1583_v17 = vmul.f32 %v2225_v16, %v1581_v15 }
 0x984   : > { %v1585_v19 = vsel %vm1584_vm9, %v1581_v15, %v1583_v17 }
 0x985   : > { %v1588_v20 = vsel %vm1586_vm10, %v1587_v18, %v1585_v19 }
 0x986   : > { %v1596_v21 = vadd.f32 1e-06, %v1588_v20 }
 0x988   : > { %2226 = vrcp.f32 %v1596_v21 }
 0x992   : > { %v2227_v24 = vpop.eup %2226 }
 0x993   : > { %v1598_v26 = vmul.f32 %v2227_v24, %v1595_v23 }
 0x995   : > { %v1605_v27 = vadd.f32 %v1914_v25, %v1598_v26 }
 0x997   : > { %2057 = vmatmul.mubr.msk.f32.vlgmr.msra.gmra.mrb[12].mxu1 %vm610_vm0, %v1605_v27 }
 0xa6a   : > { %v1686_v50 = vpop.f32.mrb[12].mxu1 }
 0xa6b   : > { %v1687_v51 = vadd.f32 %v1915_v49, %v1686_v50  ;;  %v2058_v52 = vpop.f32.mrb[13].mxu1 }
 0xa6d   : > { %v1691_v53 = vmul.f32 0.044715, %v1687_v51  ;;  %v1690_v59 = vmul.f32 0.5, %v1687_v51 }
 0xa6f   : > { %v1692_v54 = vmul.f32 %v1691_v53, %v1687_v51 }
 0xa71   : > { %v1693_v55 = vmul.f32 %v1692_v54, %v1687_v51 }
 0xa73   : > { %v1694_v56 = vadd.f32 %v1693_v55, %v1687_v51 }
 0xa75   : > { %v1695_v57 = vmul.f32 0.7978846, %v1694_v56 }
 0xa77   : > { %2228 = vtanh.f32 %v1695_v57 }
 0xa81   : > { %v2229_v58 = vpop.eup %2228 }
 0xa82   : > { %v1697_v10 = vadd.f32 1.0, %v2229_v58 }
 0xa84   : > { %v1698_v60 = vmul.f32 %v1697_v10, %v1690_v59 }
 0xa86   : > { %2092 = vmatmul.mubr.f32.vlgmr.msra.gmra.mrb[4].mxu0 %v1698_v60 }
 0xb59   : > { %v1788_v63 = vpop.f32.mrb[4].mxu0 }
 0xb5a   : > { %v1789_v1 = vadd.f32 %v1917_v62, %v1788_v63  ;;  %v2093_v2 = vpop.f32.mrb[5].mxu0 }
 0xb5c   : > { %v1792_v3 = vadd.f32 %v1789_v1, %v2671_v61 }
 0xb5e   : > { %1793 = vst.msk [vmem:[%s601_s26] sm:$0xff] %vm610_vm0, %v1792_v3 }
 0xb5f   : > { %2273 = shalt.err (!%p2270_p5)
}
 0xb60   : > { %s2274_s27 = scalar_lea.hbm %s2765_s3, 128  ;;  %s2278_s20 = scalar_lea.hbm %s2867_s1, 256 }
 0xb61   : > { %p2275_p8 = scmp.ne.s32.totalorder %s2765_s3, %s2274_s27  ;;  %p2279_p1 = scmp.lt.u32.totalorder %s2765_s3, %s2867_s1 }
 0xb62   : > { %p2280_p3 = scmp.lt.u32.totalorder %s2278_s20, %s2274_s27  ;;  %p2282_p11 = scmp.lt.u32.totalorder %s2274_s27, %s2765_s3 }
 0xb63   : > { %p2276_p9 = pnand %p2275_p8, %p2868_p12 }
 0xb64   : > { %p2281_p6 = por %p2280_p3, %p2279_p1 }
 0xb65   : > { %p2277_p0 = pneg %p2276_p9 }
 0xb66   : > { %p2283_p13 = por %p2282_p11, %p2281_p6 }
 0xb68   : > { %p2284_p7 = pnand %p2283_p13, %p2277_p0 }
 0xb6a   : > { %2287 = shalt.err (!%p2284_p7)
}
 0xb6b   : > { %2164 = dma.vmem_to_hbm [thread:$0]  (%p2868_p12), %s2767_s22, 128, %s2765_s3, %s1795_s0  }
 0xb6c PF: > { %s2869_s19 = sld [smem:[#allocation8_spill]]  ;;  %p2870_p10 = scmp.ne.s32.totalorder %s2854_s25, 0 }
 0xb6d   : > { %p2871_p2 = scmp.ge.s32.totalorder %s2326_s30, 2 }
 0xb6f   : > { %p2171_p4 = pnand %p2871_p2, %p2870_p10 }
 0xb72   : > { %s1820_s13 = sand.u32 1, %s2869_s19  }
 0xb73   : > { %s1821_s23 = scalar_lea.sflag [#allocation4], %s1820_s13 }
 0xb74   : > { %2309 = dma.done.wait (!%p2171_p4), %s1821_s23, 128  }
 0xb75   : > { %2311 = vsyncadd (!%p2171_p4), %s1821_s23, 4294967168  ;;  %s2872_s30 = sld [smem:[#allocation9_spill]]  ;;  %s2873_s15 = sld [smem:[#allocation10_spill]] }
 0xb76   : > { %s2874_s27 = smov %s2318_s28  ;;  %s2875_s28 = smov %s2322_s29 }
 0xb7b   : > { %p31_p5 = scmp.ge.s32.totalorder %s2872_s30, 4   ;;  %s2876_s29 = smov %s2873_s15 }
 0xb7d   :  { %33 = sbr.rel (!%p31_p5) target bundleno = 13 (0xd), region = 140 }
 0xb84   :  { %1826 = vsyncpa [#allocation3], 1 }
 0xb85   :  { %1828 = vsyncpa [#allocation3 + $0x1], 1 }
 0xb86   :  { %1829 = vsyncpa [#allocation4], 1 }
 0xb87   :  { %1831 = vsyncpa [#allocation4 + $0x1], 1 }

</bundles_post_ra>
